<compile_context>
chip_gen: v5e
topology: v5e:2x2
jax: 0.10.0
libtpu: 0.0.40
codegen_flags: <defaults>
</compile_context>

<pallas_src>
import functools
import math

import jax
import jax.numpy as jnp
from jax.experimental import pallas as pl
from jax.experimental.pallas import tpu as pltpu

INIT_STD = 1.0
MINIMAL_STD = 0.001
# inverse_softplus(init_std - minimal_std) = log(exp(0.999) - 1)
ACT_SHIFT = math.log(math.exp(INIT_STD - MINIMAL_STD) - 1.0)

_LANE = 128
_ABS_MAX_TILE = 16384          # hard cap on batch-tile width (lanes)
_ACT_SLAB_BYTES = 4 << 20      # target size of the (H, TB) f32 activation slab


def _round_up(v, m):
    return ((v + m - 1) // m) * m


@functools.lru_cache(maxsize=None)
def _bf16_epilogue_default():
    """bf16 bias/ReLU epilogue only on chips with a bf16-capable VPU (v6e/v7x)."""
    try:
        kind = jax.devices()[0].device_kind.lower()
    except Exception:  # pragma: no cover
        return False
    return any(tag in kind for tag in ("v6", "v7", "7x"))


def _make_kernel(bf16_epilogue):
    def kernel(x_ref, colp_ref, w23_ref, wh_ref, out_ref):
        # x: (1, TB) f32 -- batch on lanes.
        x = x_ref[...]

        w1 = colp_ref[:, 0:1]          # (H, 1) f32   fc1 weight (in_features == 1)
        b1 = colp_ref[:, 1:2]          # (H, 1)
        b2 = colp_ref[:, 2:3]          # (H, 1)
        b3 = colp_ref[:, 3:4]          # (H, 1)
        bh = colp_ref[0:5, 4:5]        # (5, 1) fused head bias, ACT_SHIFT pre-folded
                                       #        into the diagonal rows (3 and 4)

        # fc1 (K = 1): degenerate matmul done as a VPU outer-product broadcast.
        h = jnp.maximum(w1 * x + b1, 0.0)            # (H, TB) f32
        h = h.astype(jnp.bfloat16)

        if bf16_epilogue:
            # v6e/v7x: bf16 VPU -> bias add + ReLU in bf16; one cast per layer
            # (at the MXU output), h stays bf16 going into the next dot.
            b2b = b2.astype(jnp.bfloat16)
            b3b = b3.astype(jnp.bfloat16)
            h = jnp.maximum(
                jnp.dot(w23_ref[0], h, preferred_element_type=jnp.float32)
                .astype(jnp.bfloat16) + b2b, 0)
            h = jnp.maximum(
                jnp.dot(w23_ref[1], h, preferred_element_type=jnp.float32)
                .astype(jnp.bfloat16) + b3b, 0)
        else:
            # v5e: no bf16 VPU/EUP -> keep the f32 elementwise epilogue, cast to
            # bf16 only at the MXU input.
            h = jnp.maximum(
                jnp.dot(w23_ref[0], h, preferred_element_type=jnp.float32) + b2, 0.0)
            h = h.astype(jnp.bfloat16)
            h = jnp.maximum(
                jnp.dot(w23_ref[1], h, preferred_element_type=jnp.float32) + b3, 0.0)
            h = h.astype(jnp.bfloat16)

        # Fused heads: (5, H) @ (H, TB) -> (5, TB).
        # Row order: [mean0, mean1, offdiag(b), diag(a)->chol[1,1], diag(c)->chol[0,0]]
        out = jnp.dot(wh_ref[...], h, preferred_element_type=jnp.float32) + bh

        # diag_bijector: softplus(z + ACT_SHIFT) + MINIMAL_STD on the two
        # diagonal rows only (ACT_SHIFT already folded into bh rows 3 and 4).
        # Lane-dense stores; no iota/where over the full tile.
        out_ref[0:3, :] = out[0:3, :]
        out_ref[3:5, :] = jnp.logaddexp(out[3:5, :], 0.0) + MINIMAL_STD

    return kernel


def pack_params(params):
    """Pack PyTorch-style params once (outside the hot path) into 3 arrays.

    Returns:
      colp : (H, 8) f32  columns [w1, b1, b2, b3, fused-head-bias(first 5 rows), 0, 0, 0]
      w23t : (2, H, H) bf16  transposed fc2 / fc3 weights (out_features x in_features)
      wht  : (5, H) bf16     transposed fused head weight, rows =
                             [wm[:,0], wm[:,1], wc[:,1], wc[:,0], wc[:,2]]
    """
    (w1, b1), (w2, b2), (w3, b3), (wm, bm), (wc, bc) = params
    H = w1.shape[1]
    assert H >= 5, "fc_layer_size must be >= 5 to pack the fused head bias column"

    # Fused head bias in kernel row order, ACT_SHIFT folded into the diag rows.
    bh = jnp.stack([bm[0], bm[1], bc[1], bc[0] + ACT_SHIFT, bc[2] + ACT_SHIFT])

    colp = jnp.zeros((H, 8), jnp.float32)
    colp = colp.at[:, 0].set(w1.reshape(H).astype(jnp.float32))
    colp = colp.at[:, 1].set(b1.astype(jnp.float32))
    colp = colp.at[:, 2].set(b2.astype(jnp.float32))
    colp = colp.at[:, 3].set(b3.astype(jnp.float32))
    colp = colp.at[0:5, 4].set(bh.astype(jnp.float32))

    w23t = jnp.stack([w2.T, w3.T]).astype(jnp.bfloat16)                  # (2, H, H)
    wht = jnp.stack([wm[:, 0], wm[:, 1], wc[:, 1], wc[:, 0], wc[:, 2]]
                    ).astype(jnp.bfloat16)                               # (5, H)
    return colp, w23t, wht


def _choose_batch_tiling(B, H):
    """Even-split batch tiling, tb a multiple of 128 (lane axis)."""
    max_tile = min(_ABS_MAX_TILE,
                   max(_LANE, (_ACT_SLAB_BYTES // (4 * H)) // _LANE * _LANE))
    num_tiles = -(-B // max_tile)
    # v7x megacore: guarantee >= 2 tiles on the "parallel" axis whenever each
    # tile can still be a full 128-lane multiple (no-op cost on v5e/v6e).
    if num_tiles == 1 and B >= 2 * _LANE:
        num_tiles = 2
    tb = _round_up(-(-B // num_tiles), _LANE)
    b_pad = num_tiles * tb
    return tb, num_tiles, b_pad


def _vmem_limit_bytes(H, tb):
    # Pipeline allocates 2 buffers per in/out block even for constant index_maps:
    # count x, colp, the (2,H,H) bf16 weight stack, the (5,H) head and the
    # (5,tb) output, plus headroom for the (H,tb) activation intermediates.
    blocks = 2 * (tb * 4 + H * 8 * 4 + 2 * H * H * 2 + 5 * H * 2 + 5 * tb * 4)
    act = 6 * H * tb * 4
    est = blocks + act + (1 << 20)
    # Never request below the 32 MiB scoped default; stay within v7x's 64 MiB
    # physical VMEM. (If est ever exceeds 64 MiB, shrink the tile instead.)
    return int(min(64 << 20, max(32 << 20, est)))


def gaussian_nn_forward(x, packed):
    """x: (B, 1) float32; packed = pack_params(params).
    Returns (mean (B, 2), chol (B, 2, 2))."""
    colp, w23t, wht = packed
    H = colp.shape[0]
    B = x.shape[0]

    tb, num_tiles, b_pad = _choose_batch_tiling(B, H)

    x_t = x.reshape(1, -1).astype(jnp.float32)        # batch on lanes: (1, B)
    if b_pad != B:
        x_t = jnp.pad(x_t, ((0, 0), (0, b_pad - B)))

    out = pl.pallas_call(
        _make_kernel(_bf16_epilogue_default()),
        out_shape=jax.ShapeDtypeStruct((5, b_pad), jnp.float32),
        grid_spec=pltpu.PrefetchScalarGridSpec(
            num_scalar_prefetch=0,
            grid=(num_tiles,),
            in_specs=[
                pl.BlockSpec((1, tb), lambda i: (0, i)),       # x: tiled over batch lanes
                pl.BlockSpec((H, 8), lambda i: (0, 0)),        # packed fc1 w + biases
                pl.BlockSpec((2, H, H), lambda i: (0, 0, 0)),  # fc2/fc3 weights (resident)
                pl.BlockSpec((5, H), lambda i: (0, 0)),        # fused head weight
            ],
            out_specs=pl.BlockSpec((5, tb), lambda i: (0, i)),
        ),
        compiler_params=pltpu.CompilerParams(
            dimension_semantics=("parallel",),          # batch tiles shard across v7x TCs
            vmem_limit_bytes=_vmem_limit_bytes(H, tb),
        ),
    )(x_t, colp, w23t, wht)

    mean = out[0:2, :B].T                              # (B, 2)

    # Glue: rows = [m0, m1, b, softplus(a), softplus(c)];
    # fill_triangular([a,b,c]) (TFP-style) with activated diag -> [[f(c),0],[b,f(a)]].
    zero = jnp.zeros((B,), out.dtype)
    row0 = jnp.stack([out[4, :B], zero], axis=-1)
    row1 = jnp.stack([out[2, :B], out[3, :B]], axis=-1)
    chol = jnp.stack([row0, row1], axis=-2)            # (B, 2, 2)
    return mean, chol


def init_params(key, fc_layer_size, init_bias_mean=None, init_bias_chol=None):
    """PyTorch-Linear-style init: U(-1/sqrt(fan_in), 1/sqrt(fan_in)).
    Weights stored as (in_features, out_features)."""
    def linear(key, fan_in, fan_out):
        kw, kb = jax.random.split(key)
        bound = 1.0 / math.sqrt(fan_in)
        w = jax.random.uniform(kw, (fan_in, fan_out), jnp.float32, -bound, bound)
        b = jax.random.uniform(kb, (fan_out,), jnp.float32, -bound, bound)
        return w, b

    k1, k2, k3, km, kc = jax.random.split(key, 5)
    H = fc_layer_size
    p1 = linear(k1, 1, H)
    p2 = linear(k2, H, H)
    p3 = linear(k3, H, H)
    wm, bm = linear(km, H, 2)
    wc, bc = linear(kc, H, 3)
    if init_bias_mean is not None:
        bm = jnp.asarray(init_bias_mean, jnp.float32)
    if init_bias_chol is not None:
        bc = jnp.asarray(init_bias_chol, jnp.float32)
    return (p1, p2, p3, (wm, bm), (wc, bc))


def _ref_forward(x, params):
    """Pure-JAX f32 reference of GaussianNN.forward (same fill_triangular convention)."""
    (w1, b1), (w2, b2), (w3, b3), (wm, bm), (wc, bc) = params
    h = jnp.maximum(x @ w1 + b1, 0.0)
    h = jnp.maximum(h @ w2 + b2, 0.0)
    h = jnp.maximum(h @ w3 + b3, 0.0)
    mean = h @ wm + bm
    fl = h @ wc + bc                                   # [a, b, c]
    act = lambda z: jnp.logaddexp(z + ACT_SHIFT, 0.0) + MINIMAL_STD
    B = x.shape[0]
    zero = jnp.zeros((B,), jnp.float32)
    chol = jnp.stack([
        jnp.stack([act(fl[:, 2]), zero], axis=-1),
        jnp.stack([fl[:, 1], act(fl[:, 0])], axis=-1),
    ], axis=-2)
    return mean, chol


if __name__ == "__main__":
    key = jax.random.PRNGKey(0)
    k_param, k_x, k_x2 = jax.random.split(key, 3)

    fc_layer_size = 32
    batch = 8

    params = init_params(
        k_param, fc_layer_size,
        init_bias_mean=[0.0, 0.0],
        init_bias_chol=[0.0, 0.0, 0.0],
    )
    # Pack once (outside the hot path); forward only consumes packed arrays.
    packed = pack_params(params)
    fwd = jax.jit(gaussian_nn_forward)

    x = jax.random.normal(k_x, (batch, 1), jnp.float32)
    mean, chol = fwd(x, packed)
    jax.block_until_ready((mean, chol))

    assert mean.shape == (batch, 2)
    assert chol.shape == (batch, 2, 2)
    # Cholesky sanity: strictly positive diagonal, zero upper-triangle.
    assert bool(jnp.all(chol[:, 0, 0] > 0)) and bool(jnp.all(chol[:, 1, 1] > 0))
    assert bool(jnp.all(chol[:, 0, 1] == 0))

    # Tolerance check vs. f32 reference (kernel uses bf16 weights on the MXU).
    mean_ref, chol_ref = _ref_forward(x, params)
    assert float(jnp.max(jnp.abs(mean - mean_ref))) < 5e-2
    assert float(jnp.max(jnp.abs(chol - chol_ref))) < 5e-2

    # Exercise the multi-tile / padded path (2 parallel tiles, even split).
    x2 = jax.random.normal(k_x2, (300, 1), jnp.float32)
    mean2, chol2 = fwd(x2, packed)
    jax.block_until_ready((mean2, chol2))
    mean2_ref, chol2_ref = _ref_forward(x2, params)
    assert mean2.shape == (300, 2) and chol2.shape == (300, 2, 2)
    assert float(jnp.max(jnp.abs(mean2 - mean2_ref))) < 5e-2
    assert float(jnp.max(jnp.abs(chol2 - chol2_ref))) < 5e-2

    # TODO(synk): covariance / get_rsamples / log_prob are MultivariateNormal
    # distribution utilities outside forward(); not implemented as kernels.

    print("KERNEL_OK")
</pallas_src>

<mosaic_0001>
module attributes {stable_mosaic.version = 11 : i64} {
  func.func @kernel(%arg0: i32, %arg1: memref<1x128xf32, #tpu.memory_space<vmem>>, %arg2: memref<32x8xf32, #tpu.memory_space<vmem>>, %arg3: memref<2x32x32xbf16, #tpu.memory_space<vmem>>, %arg4: memref<5x32xbf16, #tpu.memory_space<vmem>>, %arg5: memref<5x128xf32, #tpu.memory_space<vmem>>) attributes {dimension_semantics = [#tpu.dimension_semantics<parallel>], iteration_bounds = array<i64: 1>, scalar_prefetch = 0 : i64, scratch_operands = 0 : i64, tpu.core_type = #tpu.core_type<tc>, window_params = [{transform_indices = @transform_0, window_bounds = array<i64: 1, 128>}, {pipeline_mode = #tpu.pipeline_mode<synchronous>, transform_indices = @transform_1, window_bounds = array<i64: 32, 8>}, {pipeline_mode = #tpu.pipeline_mode<synchronous>, transform_indices = @transform_2, window_bounds = array<i64: 2, 32, 32>}, {pipeline_mode = #tpu.pipeline_mode<synchronous>, transform_indices = @transform_3, window_bounds = array<i64: 5, 32>}, {transform_indices = @transform_4, window_bounds = array<i64: 5, 128>}]} {
    %c0 = arith.constant 0 : index
    %c0_0 = arith.constant 0 : index
    %0 = vector.load %arg1[%c0, %c0_0] : memref<1x128xf32, #tpu.memory_space<vmem>>, vector<1x128xf32>
    %c0_1 = arith.constant 0 : index
    %c0_2 = arith.constant 0 : index
    %1 = vector.load %arg2[%c0_1, %c0_2] : memref<32x8xf32, #tpu.memory_space<vmem>>, vector<32x1xf32>
    %c0_3 = arith.constant 0 : index
    %c1 = arith.constant 1 : index
    %2 = vector.load %arg2[%c0_3, %c1] : memref<32x8xf32, #tpu.memory_space<vmem>>, vector<32x1xf32>
    %c0_4 = arith.constant 0 : index
    %c2 = arith.constant 2 : index
    %3 = vector.load %arg2[%c0_4, %c2] : memref<32x8xf32, #tpu.memory_space<vmem>>, vector<32x1xf32>
    %c0_5 = arith.constant 0 : index
    %c3 = arith.constant 3 : index
    %4 = vector.load %arg2[%c0_5, %c3] : memref<32x8xf32, #tpu.memory_space<vmem>>, vector<32x1xf32>
    %c0_6 = arith.constant 0 : index
    %c4 = arith.constant 4 : index
    %5 = vector.load %arg2[%c0_6, %c4] : memref<32x8xf32, #tpu.memory_space<vmem>>, vector<5x1xf32>
    %6 = vector.broadcast %1 : vector<32x1xf32> to vector<32x128xf32>
    %7 = vector.broadcast %0 : vector<1x128xf32> to vector<32x128xf32>
    %8 = arith.mulf %6, %7 : vector<32x128xf32>
    %9 = vector.broadcast %2 : vector<32x1xf32> to vector<32x128xf32>
    %10 = arith.addf %8, %9 : vector<32x128xf32>
    %cst = arith.constant 0.000000e+00 : f32
    %11 = vector.broadcast %cst : f32 to vector<32x128xf32>
    %12 = arith.maximumf %10, %11 : vector<32x128xf32>
    %13 = arith.truncf %12 : vector<32x128xf32> to vector<32x128xbf16>
    %c0_7 = arith.constant 0 : index
    %c0_8 = arith.constant 0 : index
    %c0_9 = arith.constant 0 : index
    %14 = vector.load %arg3[%c0_7, %c0_8, %c0_9] : memref<2x32x32xbf16, #tpu.memory_space<vmem>>, vector<1x32x32xbf16>
    %15 = vector.shape_cast %14 : vector<1x32x32xbf16> to vector<32x32xbf16>
    %cst_10 = arith.constant dense<0.000000e+00> : vector<32x128xf32>
    %16 = tpu.matmul %15, %13, %cst_10 {dimension_numbers = #tpu.dot_dimension_numbers<[1], [0], [0], [1], [0, 0, 1, 1], [], []>} : vector<32x32xbf16>, vector<32x128xbf16>, vector<32x128xf32> -> vector<32x128xf32>
    %17 = vector.broadcast %3 : vector<32x1xf32> to vector<32x128xf32>
    %18 = arith.addf %16, %17 : vector<32x128xf32>
    %cst_11 = arith.constant 0.000000e+00 : f32
    %19 = vector.broadcast %cst_11 : f32 to vector<32x128xf32>
    %20 = arith.maximumf %18, %19 : vector<32x128xf32>
    %21 = arith.truncf %20 : vector<32x128xf32> to vector<32x128xbf16>
    %c1_12 = arith.constant 1 : index
    %c0_13 = arith.constant 0 : index
    %c0_14 = arith.constant 0 : index
    %22 = vector.load %arg3[%c1_12, %c0_13, %c0_14] : memref<2x32x32xbf16, #tpu.memory_space<vmem>>, vector<1x32x32xbf16>
    %23 = vector.shape_cast %22 : vector<1x32x32xbf16> to vector<32x32xbf16>
    %cst_15 = arith.constant dense<0.000000e+00> : vector<32x128xf32>
    %24 = tpu.matmul %23, %21, %cst_15 {dimension_numbers = #tpu.dot_dimension_numbers<[1], [0], [0], [1], [0, 0, 1, 1], [], []>} : vector<32x32xbf16>, vector<32x128xbf16>, vector<32x128xf32> -> vector<32x128xf32>
    %25 = vector.broadcast %4 : vector<32x1xf32> to vector<32x128xf32>
    %26 = arith.addf %24, %25 : vector<32x128xf32>
    %cst_16 = arith.constant 0.000000e+00 : f32
    %27 = vector.broadcast %cst_16 : f32 to vector<32x128xf32>
    %28 = arith.maximumf %26, %27 : vector<32x128xf32>
    %29 = arith.truncf %28 : vector<32x128xf32> to vector<32x128xbf16>
    %c0_17 = arith.constant 0 : index
    %c0_18 = arith.constant 0 : index
    %30 = vector.load %arg4[%c0_17, %c0_18] : memref<5x32xbf16, #tpu.memory_space<vmem>>, vector<5x32xbf16>
    %cst_19 = arith.constant dense<0.000000e+00> : vector<5x128xf32>
    %31 = tpu.matmul %30, %29, %cst_19 {dimension_numbers = #tpu.dot_dimension_numbers<[1], [0], [0], [1], [0, 0, 1, 1], [], []>} : vector<5x32xbf16>, vector<32x128xbf16>, vector<5x128xf32> -> vector<5x128xf32>
    %32 = vector.broadcast %5 : vector<5x1xf32> to vector<5x128xf32>
    %33 = arith.addf %31, %32 : vector<5x128xf32>
    %34 = vector.extract_strided_slice %33 {offsets = [0, 0], sizes = [3, 128], strides = [1, 1]} : vector<5x128xf32> to vector<3x128xf32>
    %c0_20 = arith.constant 0 : index
    %c0_21 = arith.constant 0 : index
    %35 = vector.load %arg5[%c0_20, %c0_21] : memref<5x128xf32, #tpu.memory_space<vmem>>, vector<3x128xf32>
    tpu.vector_store %arg5[%c0_20, %c0_21], %34 {strides = array<i32>} : memref<5x128xf32, #tpu.memory_space<vmem>>, vector<3x128xf32>,
    %36 = vector.extract_strided_slice %33 {offsets = [3, 0], sizes = [2, 128], strides = [1, 1]} : vector<5x128xf32> to vector<2x128xf32>
    %cst_22 = arith.constant 0.000000e+00 : f32
    %37 = vector.broadcast %cst_22 : f32 to vector<2x128xf32>
    %38 = arith.maximumf %36, %37 : vector<2x128xf32>
    %39 = vector.broadcast %cst_22 : f32 to vector<2x128xf32>
    %40 = arith.subf %36, %39 : vector<2x128xf32>
    %41 = arith.cmpf one, %40, %40 : vector<2x128xf32>
    %42 = vector.broadcast %cst_22 : f32 to vector<2x128xf32>
    %43 = arith.addf %36, %42 : vector<2x128xf32>
    %44 = math.absf %40 : vector<2x128xf32>
    %cst_23 = arith.constant 0.000000e+00 : f32
    %45 = vector.broadcast %cst_23 : f32 to vector<2x128xf32>
    %46 = arith.subf %45, %44 : vector<2x128xf32>
    %47 = math.exp %46 : vector<2x128xf32>
    %48 = math.log1p %47 : vector<2x128xf32>
    %49 = arith.addf %38, %48 : vector<2x128xf32>
    %50 = arith.select %41, %43, %49 : vector<2x128xi1>, vector<2x128xf32>
    %cst_24 = arith.constant 1.000000e-03 : f32
    %51 = vector.broadcast %cst_24 : f32 to vector<2x128xf32>
    %52 = arith.addf %50, %51 : vector<2x128xf32>
    %c3_25 = arith.constant 3 : index
    %c0_26 = arith.constant 0 : index
    %53 = vector.load %arg5[%c3_25, %c0_26] : memref<5x128xf32, #tpu.memory_space<vmem>>, vector<2x128xf32>
    tpu.vector_store %arg5[%c3_25, %c0_26], %52 {strides = array<i32>} : memref<5x128xf32, #tpu.memory_space<vmem>>, vector<2x128xf32>,
    return
  }
  func.func @transform_0(%arg0: i32) -> (i32, i32) {
    %c0_i32 = arith.constant 0 : i32
    %c0_i32_0 = arith.constant 0 : i32
    return %c0_i32, %arg0 : i32, i32
  }
  func.func @transform_1(%arg0: i32) -> (i32, i32) {
    %c0_i32 = arith.constant 0 : i32
    %c0_i32_0 = arith.constant 0 : i32
    %c0_i32_1 = arith.constant 0 : i32
    return %c0_i32, %c0_i32_0 : i32, i32
  }
  func.func @transform_2(%arg0: i32) -> (i32, i32, i32) {
    %c0_i32 = arith.constant 0 : i32
    %c0_i32_0 = arith.constant 0 : i32
    %c0_i32_1 = arith.constant 0 : i32
    %c0_i32_2 = arith.constant 0 : i32
    return %c0_i32, %c0_i32_0, %c0_i32_1 : i32, i32, i32
  }
  func.func @transform_3(%arg0: i32) -> (i32, i32) {
    %c0_i32 = arith.constant 0 : i32
    %c0_i32_0 = arith.constant 0 : i32
    %c0_i32_1 = arith.constant 0 : i32
    return %c0_i32, %c0_i32_0 : i32, i32
  }
  func.func @transform_4(%arg0: i32) -> (i32, i32) {
    %c0_i32 = arith.constant 0 : i32
    %c0_i32_0 = arith.constant 0 : i32
    return %c0_i32, %arg0 : i32, i32
  }
}

</mosaic_0001>

<bundles_post_ra>
// kernel: gaussian_nn_forward.1
= control target key start
LH: loop header
LB: loop body
LE: loop exit
PB: predicated region body
PF: predicated region fallthrough
CT: control target
= control target key end

     0   :  { %v299_v0 = vmov 1   ;;  %v300_v1 = vmov 0   ;;  %v301_v6 = vmov 2   ;;  %vm107_vm0 = vcmask 261120   ;;  %s373_s1 = inlined_call_operand.vmem [shape: f32[32,8], index: 1, kind: input, shape index: {}]   ;;  %s374_s0 = inlined_call_operand.vmem [shape: f32[1,128], index: 0, kind: input, shape index: {}]   ;;  %s375_s2 = inlined_call_operand.vmem [shape: bf16[2,32,32], index: 2, kind: input, shape index: {}]   ;;  %s376_s3 = inlined_call_operand.vmem [shape: bf16[5,32], index: 3, kind: input, shape index: {}]   ;;  %s377_s4 = inlined_call_operand.vmem [shape: f32[5,128], index: 4, kind: output, shape index: {}]  }
   0x1   :  { %285 = vset.pattern.permute.xlu1 %v299_v0  ;;  %284 = vset.pattern.permute.xlu0 %v300_v1  ;;  %v21_v2 = vld [vmem:[%s373_s1 + $0x10] sm:$0xff]  ;;  %v19_v3 = vld [vmem:[%s373_s1] sm:$0xff]  ;;  %v22_v4 = vld [vmem:[%s373_s1 + $0x18] sm:$0xff]  ;;  %v302_v32 = vmov 3   ;;  %v303_v55 = vmov 4  }
   0x2   :  { %60 = vperm.xlu1 %285, %v21_v2   ;;  %36 = vperm.xlu0 %284, %v21_v2   ;;  %v20_v5 = vld [vmem:[%s373_s1 + $0x8] sm:$0xff]  ;;  %v294_v9 = vld [vmem:[%s374_s0] ss:$0 sm:$0xff]  ;;  %v275_v51 = vld [vmem:[%s375_s2 + $0x10] sm:$0xff] }
   0x3   :  { %286 = vset.pattern.permute.xlu2 %v300_v1  ;;  %v274_v30 = vld [vmem:[%s375_s2 + $0x8] sm:$0xff]  ;;  %v273_v31 = vld [vmem:[%s375_s2] sm:$0xff]  ;;  %v276_v52 = vld [vmem:[%s375_s2 + $0x18] sm:$0xff] }
   0x4   :  { %26 = vperm.xlu2 %286, %v19_v3   ;;  %v23_v54 = vld [vmem:[%s373_s1] sm:$0x1f] }
   0xa   :  { %64 = vperm.xlu1 %285, %v22_v4   ;;  %41 = vperm.xlu0 %284, %v22_v4  }
   0xc   :  { %31 = vperm.xlu2 %286, %v20_v5  }
  0x12   :  { %287 = vset.pattern.permute.xlu0 %v299_v0  ;;  %56 = vperm.xlu1 %285, %v20_v5  }
  0x13   :  { %52 = vperm.xlu0 %287, %v19_v3  }
  0x14   :  { %288 = vset.pattern.permute.xlu2 %v301_v6 }
  0x15   :  { %90 = vperm.xlu2 %288, %v21_v2  }
  0x1a   :  { %289 = vset.pattern.permute.xlu1 %v301_v6 }
  0x1b   :  { %290 = vset.pattern.permute.xlu0 %v301_v6  ;;  %94 = vperm.xlu1 %289, %v22_v4  }
  0x1c   :  { %86 = vperm.xlu0 %290, %v20_v5  }
  0x1d   :  { %82 = vperm.xlu2 %288, %v19_v3  }
  0x23   :  { %291 = vset.pattern.permute.xlu1 %v302_v32 }
  0x24   :  { %153 = vperm.xlu1 %291, %v21_v2   ;;  %293 = vset.pattern.permute.xlu0 %v303_v55 }
  0x25   :  { %292 = vset.pattern.permute.xlu2 %v302_v32  ;;  %204 = vperm.xlu0 %293, %v23_v54  }
  0x26   :  { %157 = vperm.xlu2 %292, %v22_v4  }
  0x2c   :  { %145 = vperm.xlu1 %291, %v19_v3  }
  0x2e   :  { %149 = vperm.xlu2 %292, %v20_v5  }
  0x5e   :  { %v27_v10 = vpop.permute.xlu2 %26 }
  0x5f   :  { %v47_v22 = vmul.f32 %v294_v9, %v27_v10 }
  0x66   :  { %v32_v17 = vpop.permute.xlu2 %31 }
  0x67   :  { %v48_v20 = vmul.f32 %v294_v9, %v32_v17 }
  0x6f   :  { %v91_v33 = vpop.permute.xlu2 %90 }
  0x74   :  { %v61_v7 = vpop.permute.xlu1 %60  ;;  %v37_v8 = vpop.permute.xlu0 %36 }
  0x75   :  { %v49_v11 = vmul.f32 %v294_v9, %v37_v8 }
  0x77   :  { %v69_v14 = vadd.f32 %v61_v7, %v49_v11  ;;  %v83_v37 = vpop.permute.xlu2 %82 }
  0x79   :  { %v73_v18 = vmax.f32 %v69_v14, 0.0 }
  0x7c   :  { %v65_v12 = vpop.permute.xlu1 %64  ;;  %v42_v13 = vpop.permute.xlu0 %41 }
  0x7d   :  { %v50_v15 = vmul.f32 %v294_v9, %v42_v13  ;;  %v201_v9 = vld [vmem:[%s376_s3] sm:$0x7] }
  0x7f   :  { %v70_v16 = vadd.f32 %v65_v12, %v50_v15 }
  0x80   :  { %v158_v57 = vpop.permute.xlu2 %157 }
  0x81   :  { %v74_v19 = vmax.f32 %v70_v16, 0.0 }
  0x83   :  { %v76_v21 = vpack.c.bf16 %v74_v19, %v73_v18 }
  0x84   :  { %v57_v23 = vpop.permute.xlu1 %56 }
  0x85   :  { %v68_v24 = vadd.f32 %v57_v23, %v48_v20  ;;  %v53_v25 = vpop.permute.xlu0 %52  ;;  %120 = vmatpush.bf16.msra.mxu0 %v76_v21  ;;  %277 = vmatpush.bf16.msra.mxu3 %v76_v21 }
  0x86   :  { %v67_v26 = vadd.f32 %v53_v25, %v47_v22 }
  0x87   :  { %v72_v27 = vmax.f32 %v68_v24, 0.0 }
  0x88   :  { %v71_v28 = vmax.f32 %v67_v26, 0.0  ;;  %v150_v60 = vpop.permute.xlu2 %149 }
  0x8a   :  { %v75_v29 = vpack.c.bf16 %v72_v27, %v71_v28 }
  0x8c   :  { %121 = vmatpush.bf16.msra.mxu0 %v75_v29  ;;  %278 = vmatpush.bf16.msra.mxu3 %v75_v29 }
  0x8d   :  { %v95_v39 = vpop.permute.xlu1 %94 }
  0x8e   :  { %v87_v36 = vpop.permute.xlu0 %86 }
  0x8f   :  { %257 = vmatmul.msk.bf16.vlgmr.msra.gmra.mxu3 %vm107_vm0, %v274_v30  ;;  %256 = vmatmul.msk.bf16.vlgmr.msra.gmra.mxu0 %vm107_vm0, %v273_v31 }
  0x96   :  { %v154_v58 = vpop.permute.xlu1 %153 }
  0x97   :  { %v205_v10 = vpop.permute.xlu0 %204 }
  0x9e   :  { %v146_v62 = vpop.permute.xlu1 %145 }
 0x10c   :  { %v123_v34 = vpop.f32.mrf.mxu0 }
 0x10d   :  { %v124_v42 = vadd.f32 %v123_v34, %v83_v37 }
 0x10f   :  { %v133_v47 = vmax.f32 %v124_v42, 0.0 }
 0x112   :  { %v128_v35 = vpop.f32.mrf.mxu3 }
 0x113   :  { %v129_v40 = vadd.f32 %v128_v35, %v91_v33 }
 0x114   :  { %v125_v38 = vpop.f32.mrf.mxu0 }
 0x115   :  { %v126_v43 = vadd.f32 %v125_v38, %v87_v36  ;;  %v135_v45 = vmax.f32 %v129_v40, 0.0 }
 0x117   :  { %v134_v48 = vmax.f32 %v126_v43, 0.0 }
 0x119   :  { %v137_v50 = vpack.c.bf16 %v134_v48, %v133_v47 }
 0x11a   :  { %v130_v41 = vpop.f32.mrf.mxu3 }
 0x11b   :  { %v131_v44 = vadd.f32 %v130_v41, %v95_v39 }
 0x11d   :  { %v136_v46 = vmax.f32 %v131_v44, 0.0 }
 0x11f   :  { %v138_v49 = vpack.c.bf16 %v136_v46, %v135_v45 }
 0x121   :  { %182 = vmatpush.bf16.msra.mxu1 %v138_v49 }
 0x125   :  { %183 = vmatpush.bf16.msra.mxu1 %v137_v50 }
 0x128   :  { %270 = vmatmul.msk.bf16.vlgmr.msra.gmra.mxu1 %vm107_vm0, %v275_v51 }
 0x138   :  { %271 = vmatmul.msk.bf16.gmra.mxu1 %vm107_vm0, %v276_v52 }
 0x1a5   :  { %v185_v53 = vpop.f32.mrf.mxu1 }
 0x1a6   :  { %v186_v2 = vadd.f32 %v185_v53, %v146_v62 }
 0x1a8   :  { %v195_v7 = vmax.f32 %v186_v2, 0.0 }
 0x1ad   :  { %v187_v56 = vpop.f32.mrf.mxu1 }
 0x1ae   :  { %v188_v0 = vadd.f32 %v187_v56, %v150_v60 }
 0x1b0   :  { %v196_v5 = vmax.f32 %v188_v0, 0.0 }
 0x1b2   :  { %v199_v8 = vpack.c.bf16 %v196_v5, %v195_v7 }
 0x1b5   :  { %v190_v59 = vpop.f32.mrf.mxu1 }
 0x1b6   :  { %v191_v61 = vadd.f32 %v190_v59, %v154_v58 }
 0x1b8   :  { %v197_v3 = vmax.f32 %v191_v61, 0.0 }
 0x1bd   :  { %v192_v63 = vpop.f32.mrf.mxu1 }
 0x1be   :  { %v193_v1 = vadd.f32 %v192_v63, %v158_v57 }
 0x1c0   :  { %v198_v4 = vmax.f32 %v193_v1, 0.0 }
 0x1c2   :  { %v200_v6 = vpack.c.bf16 %v198_v4, %v197_v3 }
 0x1c4   :  { %216 = vmatpush.bf16.msra.mxu2 %v200_v6 }
 0x1c8   :  { %217 = vmatpush.bf16.msra.mxu2 %v199_v8 }
 0x1cb   :  { %272 = vmatmul.msk.bf16.vlgmr.msra.gmra.mxu2 %vm107_vm0, %v201_v9 }
 0x24e   :  { %v219_v11 = vpop.f32.mrf.mxu2 }
 0x24f   :  { %v220_v12 = vadd.f32 %v219_v11, %v205_v10 }
 0x251   :  { %223 = vst [vmem:[%s377_s4] sm:$0x7] %v220_v12  ;;  %v227_v13 = vand.u32 2147483647, %v220_v12  ;;  %v224_v25 = vmax.f32 %v220_v12, 0.0  ;;  %vm225_vm2 = vcmp.ne.f32.partialorder %v220_v12, %v220_v12 }
 0x253   :  { %v228_v14 = vsub.f32 0.0, %v227_v13 }
 0x255   :  { %v229_v15 = vmul.f32 1.442695, %v228_v14 }
 0x256   :  { %v221_v16 = vpop.f32.mrf.mxu2 }
 0x257   :  { %295 = vpow2.f32 %v229_v15 }
 0x25d   :  { %v296_v17 = vpop.eup %295 }
 0x25e   :  { %v231_v18 = vadd.f32 1.0, %v296_v17  ;;  %v234_v19 = vmul.f32 -0.5, %v296_v17  ;;  %v237_v21 = vand.u32 2147483647, %v296_v17 }
 0x260   :  { %297 = vlog2.f32 %v231_v18  ;;  %v235_v20 = vadd.f32 1.0, %v234_v19  ;;  %vm238_vm1 = vcmp.lt.f32.partialorder %v237_v21, 0.0004427343 }
 0x262   :  { %v236_v24 = vmul.f32 %v296_v17, %v235_v20 }
 0x266   :  { %v298_v22 = vpop.eup %297 }
 0x267   :  { %v233_v23 = vmul.f32 0.6931472, %v298_v22 }
 0x269   :  { %v239_v26 = vsel %vm238_vm1, %v236_v24, %v233_v23 }
 0x26a   :  { %v240_v27 = vadd.f32 %v239_v26, %v224_v25 }
 0x26c   :  { %v241_v28 = vsel %vm225_vm2, %v220_v12, %v240_v27 }
 0x26d   :  { %v242_v29 = vadd.f32 0.001, %v241_v28 }
 0x26f   :  { %243 = vst [vmem:[%s377_s4] sm:$0x18] %v242_v29 }

</bundles_post_ra>
